<compile_context>
chip_gen: v7x
topology: tpu7x:2x2x1
jax: 0.10.0
libtpu: 0.0.40
codegen_flags: <defaults>
</compile_context>

<pallas_src>
import jax
import jax.numpy as jnp
from jax.experimental import pallas as pl
from jax.experimental.pallas import tpu as pltpu


def _bitfit_add_bias_kernel(x_ref, bias_ref, o_ref):
    # x_ref:    (TILE_ROWS, TILE_DIM)  activation dtype (e.g. bf16)
    # bias_ref: (1, TILE_DIM)          peft dtype (f32)
    # o_ref:    (TILE_ROWS, TILE_DIM)  activation dtype
    x = x_ref[...].astype(bias_ref.dtype)       # .to(peft_dtype)
    y = x + bias_ref[...]                       # + bias (broadcast over rows)
    o_ref[...] = y.astype(o_ref.dtype)          # .to(input_dtype)


def _round_up(x: int, m: int) -> int:
    return ((x + m - 1) // m) * m


def _vmem_capacity_bytes() -> int:
    """Physical VMEM per TensorCore, with a conservative fallback."""
    try:
        info = pltpu.get_tpu_info()
        cap = int(getattr(info, "vmem_capacity_bytes", 0) or 0)
        if cap > 0:
            return cap
    except Exception:
        pass
    return 128 << 20   # v5e / v6e


def _choose_tiles(rows: int, dim: int, itemsize: int, *,
                  target_block_bytes: int,
                  min_row_blocks: int) -> tuple[int, int]:
    """Pick (tile_rows, tile_dim): large, lane/sublane-aligned streaming blocks."""
    # dtype-native sublane packing: 8 rows (f32), 16 (bf16), 32 (int8/fp8).
    row_align = max(32 // max(itemsize, 1), 8)

    # Dim tiling: keep the full dim unless it is very wide and lane-aligned,
    # in which case block it with a large multiple of 128 to bound VMEM usage.
    tile_dim = dim
    if dim >= 8192 and dim % 128 == 0:
        for cand in (4096, 2048):
            if dim % cand == 0:
                tile_dim = cand
                break

    # Row tiling: largest aligned tile whose block fits the byte target.
    max_rows = max(target_block_bytes // (tile_dim * itemsize), row_align)
    tile_rows = max((max_rows // row_align) * row_align, row_align)

    # Keep >= min_row_blocks row blocks for anything bigger than a few MiB so
    # both v7x TensorCores stream disjoint tiles and the pipeline can overlap.
    if rows * dim * itemsize > (4 << 20) and min_row_blocks > 1:
        cap = _round_up(pl.cdiv(rows, min_row_blocks), row_align)
        tile_rows = max(min(tile_rows, cap), row_align)

    if tile_rows >= rows:
        tile_rows = rows          # full-extent block (valid for any row count)
    return tile_rows, tile_dim


def bitfit_add_bias(hidden_state: jax.Array, bias: jax.Array, *,
                    target_block_bytes: int | None = None,
                    min_row_blocks: int = 8,
                    small_bypass_bytes: int = 1 << 20) -> jax.Array:
    """Apply BitFit bias add: (x.astype(bias.dtype) + bias).astype(x.dtype)."""
    orig_shape = hidden_state.shape
    dim = orig_shape[-1]
    assert bias.shape == (dim,), (bias.shape, dim)

    peft_dtype = bias.dtype
    out_dtype = hidden_state.dtype

    x2d = hidden_state.reshape(-1, dim)
    rows = x2d.shape[0]
    itemsize = jnp.dtype(out_dtype).itemsize
    total_bytes = rows * dim * itemsize

    # KiB-scale activations (decode-sized): launch + per-step overhead
    # dominates a standalone kernel; let XLA fuse the trivial add instead.
    if total_bytes <= small_bypass_bytes:
        return (hidden_state.astype(peft_dtype) + bias).astype(out_dtype)

    vmem_cap = _vmem_capacity_bytes()
    if target_block_bytes is None:
        # ~4 MiB blocks already sit past the HBM-roofline knee; smaller blocks
        # on 64 MiB-VMEM parts (v7x) leave headroom and improve 2-TC balance.
        target_block_bytes = (4 << 20) if vmem_cap <= (64 << 20) else (8 << 20)

    tile_rows, tile_dim = _choose_tiles(
        rows, dim, itemsize,
        target_block_bytes=target_block_bytes,
        min_row_blocks=min_row_blocks)

    n_row_blocks = pl.cdiv(rows, tile_rows)
    n_dim_blocks = pl.cdiv(dim, tile_dim)
    # dim outer / rows inner: bias block index is constant over the inner loop.
    grid = (n_dim_blocks, n_row_blocks)

    bias2d = bias.reshape(1, dim)

    # VMEM budget: 2x double-buffered input block + 2x output block + bias +
    # slack for the f32 intermediates. Capped generation-aware.
    block_bytes = tile_rows * tile_dim * itemsize
    want = 4 * block_bytes + 2 * tile_dim * 4 + (4 << 20)
    cap = (40 << 20) if vmem_cap <= (64 << 20) else (48 << 20)
    vmem_limit = int(min(max(want, 16 << 20), cap))

    def _call(dim_semantics):
        return pl.pallas_call(
            _bitfit_add_bias_kernel,
            out_shape=jax.ShapeDtypeStruct((rows, dim), out_dtype),
            grid_spec=pltpu.PrefetchScalarGridSpec(
                num_scalar_prefetch=0,
                grid=grid,
                in_specs=[
                    pl.BlockSpec((tile_rows, tile_dim), lambda j, i: (i, j)),
                    pl.BlockSpec((1, tile_dim), lambda j, i: (0, j)),  # resident bias
                ],
                out_specs=pl.BlockSpec((tile_rows, tile_dim),
                                       lambda j, i: (i, j)),
            ),
            compiler_params=pltpu.CompilerParams(
                dimension_semantics=dim_semantics,
                vmem_limit_bytes=vmem_limit),
        )(x2d, bias2d)

    parallel = getattr(pltpu, "PARALLEL", "parallel")
    core_parallel = getattr(pltpu, "CORE_PARALLEL", None)
    candidates = []
    if core_parallel is not None:
        # Row axis core-parallel: guarantees both v7x TensorCores stream
        # disjoint row tiles (the main lever for this HBM-bound kernel).
        candidates.append((parallel, core_parallel))
    candidates.append((parallel, parallel))

    out2d = None
    last_err = None
    for sem in candidates:
        try:
            out2d = _call(sem)
            break
        except Exception as e:   # lowering/compile rejection -> fall back
            last_err = e         # (eager dispatch surfaces compile errors here)
    if out2d is None:
        raise last_err

    return out2d.reshape(orig_shape)


def _reference(hidden_state, bias, peft_dtype):
    return (hidden_state.astype(peft_dtype) + bias).astype(hidden_state.dtype)


if __name__ == "__main__":
    peft_dtype = jnp.float32     # peft_config.peft_dtype
    act_dtype = jnp.bfloat16     # dtype of hidden_state

    # --- Test 1: small shape consistent with the module forward
    #     [batch, seq, hidden]; force the Pallas path (bypass disabled).
    batch, seq, hidden = 2, 8, 32
    kx, kb = jax.random.split(jax.random.PRNGKey(0))
    hidden_state = jax.random.normal(
        kx, (batch, seq, hidden), dtype=jnp.float32).astype(act_dtype)
    # Module __init__ uses torch.zeros(dim); use a non-zero bias so the add
    # path is actually exercised.
    bias = jax.random.normal(kb, (hidden,), dtype=peft_dtype) * 0.1

    out = jax.block_until_ready(
        bitfit_add_bias(hidden_state, bias, small_bypass_bytes=0))
    ref = _reference(hidden_state, bias, peft_dtype)
    assert out.shape == hidden_state.shape and out.dtype == hidden_state.dtype
    assert jnp.allclose(out.astype(jnp.float32), ref.astype(jnp.float32),
                        atol=1e-2, rtol=1e-2)

    # --- Test 2: rows not divisible by tile_rows (masked tail-block path),
    #     multiple row blocks (exercises the core-parallel / parallel row axis).
    batch2, seq2, hidden2 = 5, 4, 256          # rows = 20, tile_rows -> 16
    kx2, kb2 = jax.random.split(jax.random.PRNGKey(1))
    hs2 = jax.random.normal(
        kx2, (batch2, seq2, hidden2), dtype=jnp.float32).astype(act_dtype)
    bias2 = jax.random.normal(kb2, (hidden2,), dtype=peft_dtype) * 0.1

    out2 = jax.block_until_ready(
        bitfit_add_bias(hs2, bias2,
                        target_block_bytes=16 * hidden2 * 2,   # tiny blocks
                        small_bypass_bytes=0))
    ref2 = _reference(hs2, bias2, peft_dtype)
    assert out2.shape == hs2.shape and out2.dtype == hs2.dtype
    assert jnp.allclose(out2.astype(jnp.float32), ref2.astype(jnp.float32),
                        atol=1e-2, rtol=1e-2)

    # --- Test 3: default arguments -> small-shape bypass (plain jnp path).
    out3 = jax.block_until_ready(bitfit_add_bias(hidden_state, bias))
    assert out3.shape == hidden_state.shape and out3.dtype == hidden_state.dtype
    assert jnp.allclose(out3.astype(jnp.float32), ref.astype(jnp.float32),
                        atol=1e-2, rtol=1e-2)

    print("KERNEL_OK")
</pallas_src>

<mosaic_0001>
module attributes {stable_mosaic.version = 11 : i64} {
  func.func @_bitfit_add_bias_kernel(%arg0: i32, %arg1: i32, %arg2: memref<16x32xbf16, #tpu.memory_space<vmem>>, %arg3: memref<1x32xf32, #tpu.memory_space<vmem>>, %arg4: memref<16x32xbf16, #tpu.memory_space<vmem>>) attributes {dimension_semantics = [#tpu.dimension_semantics<parallel>, #tpu.dimension_semantics<core_parallel>], iteration_bounds = array<i64: 1, 1>, scalar_prefetch = 0 : i64, scratch_operands = 0 : i64, tpu.core_type = #tpu.core_type<tc>, window_params = [{transform_indices = @transform_0, window_bounds = array<i64: 16, 32>}, {transform_indices = @transform_1, window_bounds = array<i64: 1, 32>}, {transform_indices = @transform_2, window_bounds = array<i64: 16, 32>}]} {
    %c0 = arith.constant 0 : index
    %c0_0 = arith.constant 0 : index
    %0 = vector.load %arg2[%c0, %c0_0] : memref<16x32xbf16, #tpu.memory_space<vmem>>, vector<16x32xbf16>
    %1 = arith.extf %0 : vector<16x32xbf16> to vector<16x32xf32>
    %c0_1 = arith.constant 0 : index
    %c0_2 = arith.constant 0 : index
    %2 = vector.load %arg3[%c0_1, %c0_2] : memref<1x32xf32, #tpu.memory_space<vmem>>, vector<1x32xf32>
    %3 = vector.broadcast %2 : vector<1x32xf32> to vector<16x32xf32>
    %4 = arith.addf %1, %3 : vector<16x32xf32>
    %5 = arith.truncf %4 : vector<16x32xf32> to vector<16x32xbf16>
    %c0_3 = arith.constant 0 : index
    %c0_4 = arith.constant 0 : index
    %6 = vector.load %arg4[%c0_3, %c0_4] : memref<16x32xbf16, #tpu.memory_space<vmem>>, vector<16x32xbf16>
    tpu.vector_store %arg4[%c0_3, %c0_4], %5 {strides = array<i32>} : memref<16x32xbf16, #tpu.memory_space<vmem>>, vector<16x32xbf16>,
    return
  }
  func.func @transform_0(%arg0: i32, %arg1: i32) -> (i32, i32) {
    %c0_i32 = arith.constant 0 : i32
    return %arg1, %arg0 : i32, i32
  }
  func.func @transform_1(%arg0: i32, %arg1: i32) -> (i32, i32) {
    %c0_i32 = arith.constant 0 : i32
    %c0_i32_0 = arith.constant 0 : i32
    return %c0_i32, %arg0 : i32, i32
  }
  func.func @transform_2(%arg0: i32, %arg1: i32) -> (i32, i32) {
    %c0_i32 = arith.constant 0 : i32
    return %arg1, %arg0 : i32, i32
  }
}

module attributes {stable_mosaic.version = 11 : i64} {
  func.func @_bitfit_add_bias_kernel(%arg0: i32, %arg1: i32, %arg2: memref<16x32xbf16, #tpu.memory_space<vmem>>, %arg3: memref<1x32xf32, #tpu.memory_space<vmem>>, %arg4: memref<16x32xbf16, #tpu.memory_space<vmem>>) attributes {dimension_semantics = [#tpu.dimension_semantics<parallel>, #tpu.dimension_semantics<parallel>], iteration_bounds = array<i64: 1, 1>, scalar_prefetch = 0 : i64, scratch_operands = 0 : i64, tpu.core_type = #tpu.core_type<tc>, window_params = [{transform_indices = @transform_0, window_bounds = array<i64: 16, 32>}, {transform_indices = @transform_1, window_bounds = array<i64: 1, 32>}, {transform_indices = @transform_2, window_bounds = array<i64: 16, 32>}]} {
    %c0 = arith.constant 0 : index
    %c0_0 = arith.constant 0 : index
    %0 = vector.load %arg2[%c0, %c0_0] : memref<16x32xbf16, #tpu.memory_space<vmem>>, vector<16x32xbf16>
    %1 = arith.extf %0 : vector<16x32xbf16> to vector<16x32xf32>
    %c0_1 = arith.constant 0 : index
    %c0_2 = arith.constant 0 : index
    %2 = vector.load %arg3[%c0_1, %c0_2] : memref<1x32xf32, #tpu.memory_space<vmem>>, vector<1x32xf32>
    %3 = vector.broadcast %2 : vector<1x32xf32> to vector<16x32xf32>
    %4 = arith.addf %1, %3 : vector<16x32xf32>
    %5 = arith.truncf %4 : vector<16x32xf32> to vector<16x32xbf16>
    %c0_3 = arith.constant 0 : index
    %c0_4 = arith.constant 0 : index
    %6 = vector.load %arg4[%c0_3, %c0_4] : memref<16x32xbf16, #tpu.memory_space<vmem>>, vector<16x32xbf16>
    tpu.vector_store %arg4[%c0_3, %c0_4], %5 {strides = array<i32>} : memref<16x32xbf16, #tpu.memory_space<vmem>>, vector<16x32xbf16>,
    return
  }
  func.func @transform_0(%arg0: i32, %arg1: i32) -> (i32, i32) {
    %c0_i32 = arith.constant 0 : i32
    return %arg1, %arg0 : i32, i32
  }
  func.func @transform_1(%arg0: i32, %arg1: i32) -> (i32, i32) {
    %c0_i32 = arith.constant 0 : i32
    %c0_i32_0 = arith.constant 0 : i32
    return %c0_i32, %arg0 : i32, i32
  }
  func.func @transform_2(%arg0: i32, %arg1: i32) -> (i32, i32) {
    %c0_i32 = arith.constant 0 : i32
    return %arg1, %arg0 : i32, i32
  }
}

</mosaic_0001>

<bundles_post_ra>
// kernel: tpu_custom_call.1
= control target key start
LH: loop header
LB: loop body
LE: loop exit
PB: predicated region body
PF: predicated region fallthrough
CT: control target
= control target key end

     0   :  { %s169_s9 = sld [smem:[#allocation0]]   ;;  %s203_s0 = inlined_call_operand.hbm [shape: bf16[16,32], index: 0, kind: input, shape index: {}]   ;;  %s204_s1 = inlined_call_operand.vmem [shape: f32[1,32], index: 1, kind: input, shape index: {}]   ;;  %s205_s2 = inlined_call_operand.hbm [shape: bf16[16,32], index: 2, kind: output, shape index: {}]  }
   0x1   :  { %7 = vsyncpa [#allocation3], 0 }
   0x2   :  { %8 = vsyncpa [#allocation4], 0  ;;  %s150_s14 = smov [#allocation2]   ;;  %s100_s19 = scalar_lea.hbm %s203_s0, 128 }
   0x3   :  { %s17_s15 = sshll.u32 %s150_s14, 4  ;;  %s18_s15 = int_to_ptr.vmem [resolvable:$true] %s17_s15 }
   0x6   :  { %s86_s10 = sshll.u32 %s169_s9, 7 }
   0x7   :  { %s16_s13 = scalar_lea.hbm %s203_s0, %s86_s10 }
   0x8   :  { %s98_s16 = scalar_lea.hbm %s16_s13, 128  ;;  %p101_p1 = scmp.lt.u32.totalorder %s16_s13, %s203_s0 }
   0x9   :  { %p99_p0 = scmp.ne.s32.totalorder %s16_s13, %s98_s16  ;;  %p102_p2 = scmp.lt.u32.totalorder %s100_s19, %s98_s16 }
   0xa   :  { %p104_p4 = scmp.lt.u32.totalorder %s98_s16, %s16_s13 }
   0xb   :  { %p103_p3 = por %p102_p2, %p101_p1 }
   0xd   :  { %p105_p5 = por %p104_p4, %p103_p3 }
   0xf   :  { %p106_p6 = pnand %p105_p5, %p99_p0 }
  0x11   :  { %109 = shalt.err (!%p106_p6)
}
  0x12   :  { %s110_s22 = scalar_lea.vmem %s18_s15, 128  ;;  %p115_p8 = scmp.lt.s32.totalorder %s18_s15, %s18_s15 }
  0x13   :  { %p111_p7 = scmp.ne.s32.totalorder %s18_s15, %s110_s22  ;;  %p116_p9 = scmp.lt.s32.totalorder %s110_s22, %s110_s22 }
  0x15   :  { %p117_p10 = por %p116_p9, %p115_p8 }
  0x17   :  { %p118_p11 = pnand %p117_p10, %p111_p7 }
  0x19   :  { %121 = shalt.err (!%p118_p11)
}
  0x1a   :  { %s151_s23 = smov 64   ;;  %s152_s24 = smov 4  }
  0x1b   :  { %23 = dma.hbm_to_vmem [thread:$0]  %s16_s13, 128, %s18_s15, [#allocation3], %s151_s23, %s151_s23, %s152_s24  }
  0x1c   :  { %146 = dma.done.wait [#allocation3], 128  }
  0x1d   :  { %147 = vsyncadd [#allocation3], 4294967168  ;;  %v91_v0 = vld [vmem:[#allocation2] sm:$0xff]   ;;  %s153_s26 = smov [#allocation5]   ;;  %vm52_vm0 = vcmask 257024   ;;  %s62_s30 = scalar_lea.hbm %s205_s2, %s86_s10 }
  0x1e   :  { %v81_v1 = vld [vmem:[%s204_s1] ss:$0 sm:$0xff]  ;;  %v92_v2 = vunpack.c.l.bf16 %v91_v0  ;;  %v93_v3 = vunpack.c.h.bf16 %v91_v0  ;;  %s63_s27 = sshll.u32 %s153_s26, 4  ;;  %s64_s27 = int_to_ptr.vmem [resolvable:$true] %s63_s27 }
  0x1f   :  { %s122_s3 = scalar_lea.vmem %s64_s27, 128  ;;  %p127_p13 = scmp.lt.s32.totalorder %s64_s27, %s64_s27 }
  0x20   :  { %v42_v4 = vadd.f32 %v92_v2, %v81_v1  ;;  %v43_v5 = vadd.f32 %v93_v3, %v81_v1  ;;  %p123_p12 = scmp.ne.s32.totalorder %s64_s27, %s122_s3  ;;  %p128_p0 = scmp.lt.s32.totalorder %s122_s3, %s122_s3 }
  0x22   :  { %v87_v6 = vpack.c.bf16 %v42_v4, %v42_v4  ;;  %v88_v7 = vpack.c.bf16 %v43_v5, %v43_v5  ;;  %p129_p1 = por %p128_p0, %p127_p13 }
  0x24   :  { %53 = vst.msk [vmem:[#allocation5] sm:$0xf] %vm52_vm0, %v87_v6  ;;  %54 = vst.msk [vmem:[#allocation5 + $0x4] sm:$0xf] %vm52_vm0, %v88_v7  ;;  %p130_p2 = pnand %p129_p1, %p123_p12 }
  0x26   :  { %133 = shalt.err (!%p130_p2)
}
  0x27   :  { %s134_s1 = scalar_lea.hbm %s62_s30, 128  ;;  %s136_s6 = scalar_lea.hbm %s205_s2, 128 }
  0x28   :  { %p135_p3 = scmp.ne.s32.totalorder %s62_s30, %s134_s1  ;;  %p137_p4 = scmp.lt.u32.totalorder %s62_s30, %s205_s2 }
  0x29   :  { %p138_p5 = scmp.lt.u32.totalorder %s136_s6, %s134_s1  ;;  %p140_p7 = scmp.lt.u32.totalorder %s134_s1, %s62_s30 }
  0x2b   :  { %p139_p6 = por %p138_p5, %p137_p4 }
  0x2d   :  { %p141_p8 = por %p140_p7, %p139_p6 }
  0x2f   :  { %p142_p9 = pnand %p141_p8, %p135_p3 }
  0x31   :  { %145 = shalt.err (!%p142_p9)
}
  0x32   :  { %69 = dma.vmem_to_hbm [thread:$0]  %s64_s27, 128, %s62_s30, [#allocation4], %s151_s23, %s151_s23, %s152_s24  }
  0x33   :  { %148 = dma.done.wait [#allocation4], 128  }
  0x34   :  { %149 = vsyncadd [#allocation4], 4294967168 }
  0x35   :  { %73 = vsyncpa [#allocation3], 1 }
  0x36   :  { %74 = vsyncpa [#allocation4], 1 }

// kernel: tpu_custom_call.1
= control target key start
LH: loop header
LB: loop body
LE: loop exit
PB: predicated region body
PF: predicated region fallthrough
CT: control target
= control target key end

     0   :  { %7 = vsyncpa [#allocation3], 0  ;;  %s180_s0 = inlined_call_operand.hbm [shape: bf16[16,32], index: 0, kind: input, shape index: {}]   ;;  %s181_s1 = inlined_call_operand.vmem [shape: f32[1,32], index: 1, kind: input, shape index: {}]   ;;  %s182_s2 = inlined_call_operand.hbm [shape: bf16[16,32], index: 2, kind: output, shape index: {}]  }
   0x1   :  { %8 = vsyncpa [#allocation4], 0  ;;  %s128_s9 = smov [#allocation2]   ;;  %s80_s13 = scalar_lea.hbm %s180_s0, 128 }
   0x2   :  { %s14_s10 = sshll.u32 %s128_s9, 4  ;;  %p81_p0 = scmp.ne.s32.totalorder %s180_s0, %s80_s13  ;;  %s15_s10 = int_to_ptr.vmem [resolvable:$true] %s14_s10 }
   0x3   :  { %p84_p1 = scmp.lt.u32.totalorder %s80_s13, %s180_s0 }
   0x5   :  { %p86_p2 = pnand %p84_p1, %p81_p0 }
   0x7   :  { %89 = shalt.err (!%p86_p2)
}
   0x8   :  { %s90_s18 = scalar_lea.vmem %s15_s10, 128  ;;  %p95_p4 = scmp.lt.s32.totalorder %s15_s10, %s15_s10 }
   0x9   :  { %p91_p3 = scmp.ne.s32.totalorder %s15_s10, %s90_s18  ;;  %p96_p5 = scmp.lt.s32.totalorder %s90_s18, %s90_s18 }
   0xb   :  { %p97_p6 = por %p96_p5, %p95_p4 }
   0xd   :  { %p98_p7 = pnand %p97_p6, %p91_p3 }
   0xf   :  { %101 = shalt.err (!%p98_p7)
}
  0x10   :  { %s129_s19 = smov 64   ;;  %s130_s20 = smov 4  }
  0x11   :  { %20 = dma.hbm_to_vmem [thread:$0]  %s180_s0, 128, %s15_s10, [#allocation3], %s129_s19, %s129_s19, %s130_s20  }
  0x12   :  { %124 = dma.done.wait [#allocation3], 128  }
  0x13   :  { %125 = vsyncadd [#allocation3], 4294967168  ;;  %v73_v0 = vld [vmem:[#allocation2] sm:$0xff]   ;;  %s131_s25 = smov [#allocation5]   ;;  %vm47_vm0 = vcmask 257024  }
  0x14   :  { %v67_v1 = vld [vmem:[%s181_s1] ss:$0 sm:$0xff]  ;;  %v74_v2 = vunpack.c.l.bf16 %v73_v0  ;;  %v75_v3 = vunpack.c.h.bf16 %v73_v0  ;;  %s55_s26 = sshll.u32 %s131_s25, 4  ;;  %s56_s26 = int_to_ptr.vmem [resolvable:$true] %s55_s26 }
  0x15   :  { %s102_s0 = scalar_lea.vmem %s56_s26, 128  ;;  %p107_p9 = scmp.lt.s32.totalorder %s56_s26, %s56_s26 }
  0x16   :  { %v37_v4 = vadd.f32 %v74_v2, %v67_v1  ;;  %v38_v5 = vadd.f32 %v75_v3, %v67_v1  ;;  %p103_p8 = scmp.ne.s32.totalorder %s56_s26, %s102_s0  ;;  %p108_p10 = scmp.lt.s32.totalorder %s102_s0, %s102_s0 }
  0x18   :  { %v70_v6 = vpack.c.bf16 %v37_v4, %v37_v4  ;;  %v71_v7 = vpack.c.bf16 %v38_v5, %v38_v5  ;;  %p109_p11 = por %p108_p10, %p107_p9 }
  0x1a   :  { %48 = vst.msk [vmem:[#allocation5] sm:$0xf] %vm47_vm0, %v70_v6  ;;  %49 = vst.msk [vmem:[#allocation5 + $0x4] sm:$0xf] %vm47_vm0, %v71_v7  ;;  %p110_p12 = pnand %p109_p11, %p103_p8 }
  0x1c   :  { %113 = shalt.err (!%p110_p12)
}
  0x1d   :  { %s114_s28 = scalar_lea.hbm %s182_s2, 128 }
  0x1e   :  { %p115_p13 = scmp.ne.s32.totalorder %s182_s2, %s114_s28  ;;  %p118_p0 = scmp.lt.u32.totalorder %s114_s28, %s182_s2 }
  0x20   :  { %p120_p1 = pnand %p118_p0, %p115_p13 }
  0x22   :  { %123 = shalt.err (!%p120_p1)
}
  0x23   :  { %61 = dma.vmem_to_hbm [thread:$0]  %s56_s26, 128, %s182_s2, [#allocation4], %s129_s19, %s129_s19, %s130_s20  }
  0x24   :  { %126 = dma.done.wait [#allocation4], 128  }
  0x25   :  { %127 = vsyncadd [#allocation4], 4294967168 }
  0x26   :  { %65 = vsyncpa [#allocation3], 1 }
  0x27   :  { %66 = vsyncpa [#allocation4], 1 }

</bundles_post_ra>
